<compile_context>
chip_gen: v6e
topology: v6e:2x2x1
jax: 0.10.0
libtpu: 0.0.40
codegen_flags: <defaults>
</compile_context>

<pallas_src>
import math

import jax
import jax.numpy as jnp
from jax import lax
from jax.experimental import pallas as pl
from jax.experimental.pallas import tpu as pltpu

_LOGVAR_MIN = math.log(0.1)
_LOGVAR_MAX = math.log(2.0)
_MU_MIN, _MU_MAX = -3.0, 3.0
_LN_EPS = 1e-5
_ONEHOT_MAX_CODES = 512          # above this, one-hot VALU/MXU cost dominates


def _confounder_prior_kernel(ids_ref, h_ref, emb_ref, w1_ref, w_mu2_ref,
                             vecs_ref, out_ref):
    """One grid step handles one block of flattened (B*S) rows.

    vecs_ref rows: 0 = [b_mu1 | b_lv1], 1 = [ln_gamma | 0], 2 = [ln_beta | 0],
                   3 = [b_mu2 | 0], 4..7 = padding.
    out_ref lanes: [:conf] = mu, [conf:] = logvar.
    """
    bn, hp = h_ref.shape
    num_codes, _ = emb_ref.shape
    conf = out_ref.shape[1] // 2
    cdt = h_ref.dtype                       # matmul operand dtype (bf16 autocast)

    # --- embedding gather ----------------------------------------------------
    ids = jnp.clip(ids_ref[...], 0, num_codes - 1)                   # (bn, 1) i32
    if num_codes <= _ONEHOT_MAX_CODES:
        # one-hot MXU matmul: exact row select, no data-dependent gather.
        code_iota = lax.broadcasted_iota(jnp.int32, (bn, num_codes), 1)
        onehot = (ids == code_iota).astype(cdt)                      # (bn, codes)
        code_feat = jnp.dot(onehot, emb_ref[...],
                            preferred_element_type=jnp.float32).astype(cdt)
    else:
        # TODO(synk): large-codebook path; swap to DMA gather if jnp.take is slow.
        code_feat = jnp.take(emb_ref[...], ids[:, 0], axis=0).astype(cdt)

    h = h_ref[...]                                                   # (bn, hp) bf16

    # --- fused first layer: [mu head | logvar head] in one matmul pair -------
    w1 = w1_ref[...]                                                 # (hp+cd, 2conf)
    vecs = vecs_ref[...]                                             # (8, 2conf) f32
    pre = (jnp.dot(h, w1[:hp, :], preferred_element_type=jnp.float32)
           + jnp.dot(code_feat, w1[hp:, :], preferred_element_type=jnp.float32)
           + vecs[0:1, :])                                           # (bn, 2conf) f32
    pre_mu = pre[:, :conf]
    pre_lv = pre[:, conf:]

    # --- mu head: LayerNorm -> Linear -> Tanh -> clamp (f32 elementwise) -----
    mean = jnp.mean(pre_mu, axis=-1, keepdims=True)
    var = jnp.mean(jnp.square(pre_mu - mean), axis=-1, keepdims=True)
    ln = (pre_mu - mean) * lax.rsqrt(var + _LN_EPS)
    ln = ln * vecs[1:2, :conf] + vecs[2:3, :conf]
    mu = jnp.tanh(jnp.dot(ln.astype(cdt), w_mu2_ref[...],
                          preferred_element_type=jnp.float32) + vecs[3:4, :conf])
    mu = jnp.clip(mu, _MU_MIN, _MU_MAX)     # no-op after tanh; kept for fidelity

    # --- logvar head: Hardtanh ------------------------------------------------
    logvar = jnp.clip(pre_lv, _LOGVAR_MIN, _LOGVAR_MAX)

    # single lane-dense packed store
    out_ref[...] = jnp.concatenate([mu, logvar], axis=-1).astype(out_ref.dtype)


def _round_up(x, m):
    return (x + m - 1) // m * m


def _choose_rows_block(n_rows, bytes_per_row, tile_budget_bytes=16 * 1024 * 1024):
    """Row block from a VMEM byte budget (x2 for double-buffering), preferring a
    block that divides the (16-rounded) row count so no padded copy of h is
    materialized in the wrapper. Returns (block_n, n_pad)."""
    cap = tile_budget_bytes // max(2 * bytes_per_row, 1)
    cap = max(256, min(8192, cap))
    cap = (cap // 16) * 16                       # bf16 sublane pack friendly
    n16 = _round_up(n_rows, 16)
    if n16 <= cap:
        return n16, n16                          # single grid step
    for k in range(cap // 16, 15, -1):           # largest divisor >= 256 rows
        blk = 16 * k
        if n16 % blk == 0:
            return blk, n16
    # Ragged row count with no good divisor: pad up to one extra block.
    return cap, _round_up(n_rows, cap)


def confounder_prior_forward(h, code_ids, params, *, momentum=0.95,
                             compute_dtype=jnp.bfloat16):
    """JAX/Pallas equivalent of ConfounderPrior.forward.

    Returns ((mu, logvar), new_code_emb_momentum); the momentum-buffer update
    (an in-place nn.Module buffer write in PyTorch) is returned functionally.
    compute_dtype mirrors torch.autocast(bfloat16) on the matmuls.
    """
    B, S, Hp = h.shape
    num_codes, code_dim = params["code_embed_weight"].shape
    conf_dim = params["w_mu2"].shape[0]

    # Momentum EMA update of the code-embedding buffer (tiny elementwise op).
    new_momentum = (momentum * params["code_emb_momentum"]
                    + (1.0 - momentum) * params["code_embed_weight"]
                    ).astype(jnp.float32)

    # Truncate code_ids to seq_len, as the torch module does (longer only).
    if code_ids.ndim == 2 and code_ids.shape[1] != S:
        if code_ids.shape[1] < S:
            raise ValueError("code_ids has fewer columns than seq_len")
        code_ids = code_ids[:, :S]
    code_ids = code_ids.astype(jnp.int32)

    # Flatten (B, S) rows.
    n_rows = B * S
    h2 = h.reshape(n_rows, Hp).astype(compute_dtype)
    ids2 = code_ids.reshape(n_rows, 1)

    out_dtype = compute_dtype
    h_bytes = jnp.dtype(compute_dtype).itemsize
    out_bytes = jnp.dtype(out_dtype).itemsize
    bytes_per_row = Hp * h_bytes + 2 * conf_dim * out_bytes + 4
    block_n, n_pad = _choose_rows_block(n_rows, bytes_per_row)
    if n_pad != n_rows:
        # Only triggers for ragged B*S; pads at most a fraction of one block.
        h2 = jnp.pad(h2, ((0, n_pad - n_rows), (0, 0)))
        ids2 = jnp.pad(ids2, ((0, n_pad - n_rows), (0, 0)))
    grid = (n_pad // block_n,)

    # bf16 operands for the MXU; tiny parameter tables stay resident.
    emb = new_momentum.astype(compute_dtype)
    w1 = params["w1"].astype(compute_dtype)
    w_mu2 = params["w_mu2"].astype(compute_dtype)
    vecs = params["vecs"]                                      # f32 (8, 2*conf)

    rows = lambda i: (i, 0)      # per-step row tile
    full = lambda i: (0, 0)      # resident parameter tables

    flops = 2 * n_pad * (num_codes * code_dim
                         + (Hp + code_dim) * 2 * conf_dim
                         + conf_dim * conf_dim)
    bytes_accessed = (n_pad * bytes_per_row
                      + h_bytes * (num_codes * code_dim
                                   + (Hp + code_dim) * 2 * conf_dim
                                   + conf_dim * conf_dim)
                      + 4 * 8 * 2 * conf_dim)
    cost = pl.CostEstimate(flops=flops,
                           transcendentals=n_pad * (conf_dim + 1),
                           bytes_accessed=bytes_accessed)

    out = pl.pallas_call(
        _confounder_prior_kernel,
        out_shape=jax.ShapeDtypeStruct((n_pad, 2 * conf_dim), out_dtype),
        grid_spec=pltpu.PrefetchScalarGridSpec(
            num_scalar_prefetch=0,
            grid=grid,
            in_specs=[
                pl.BlockSpec((block_n, 1), rows),                  # code_ids rows
                pl.BlockSpec((block_n, Hp), rows),                 # h rows
                pl.BlockSpec((num_codes, code_dim), full),         # momentum emb
                pl.BlockSpec((Hp + code_dim, 2 * conf_dim), full), # fused W1
                pl.BlockSpec((conf_dim, conf_dim), full),          # mu2 W
                pl.BlockSpec((8, 2 * conf_dim), full),             # merged vectors
            ],
            out_specs=pl.BlockSpec((block_n, 2 * conf_dim), rows), # packed mu|logvar
        ),
        compiler_params=pltpu.CompilerParams(
            dimension_semantics=("parallel",),
            vmem_limit_bytes=32 * 1024 * 1024),
        cost_estimate=cost,
    )(ids2, h2, emb, w1, w_mu2, vecs)

    mu = out[:n_rows, :conf_dim].reshape(B, S, conf_dim)
    logvar = out[:n_rows, conf_dim:].reshape(B, S, conf_dim)
    return (mu, logvar), new_momentum


def init_params(key, num_codes, code_dim, conf_dim, h_proj_dim):
    """Mirrors ConfounderPrior.__init__ init; stores fused / merged layouts."""
    ks = jax.random.split(key, 7)
    in_dim = h_proj_dim + code_dim
    # mu_net[0]: kaiming_normal_(nonlinearity='linear') => N(0, 1/fan_in)
    w_mu1 = jax.random.normal(ks[0], (in_dim, conf_dim), jnp.float32) / math.sqrt(in_dim)
    bound = 1.0 / math.sqrt(in_dim)
    b_mu1 = jax.random.uniform(ks[1], (conf_dim,), jnp.float32, -bound, bound)
    # mu_net[2]: uniform(-0.01, 0.01) weight, zero bias
    w_mu2 = jax.random.uniform(ks[2], (conf_dim, conf_dim), jnp.float32, -0.01, 0.01)
    # logvar_net[0]: default torch Linear init
    w_lv1 = jax.random.uniform(ks[3], (in_dim, conf_dim), jnp.float32, -bound, bound)
    b_lv1 = jax.random.uniform(ks[4], (conf_dim,), jnp.float32, -bound, bound)

    # Fused first-layer weight (pre-transposed): cols [:conf]=mu head, [conf:]=lv head.
    w1 = jnp.concatenate([w_mu1, w_lv1], axis=1)                  # (in_dim, 2*conf)
    # Merged small vectors (one input stream): row0=[b_mu1|b_lv1], row1=[gamma|0],
    # row2=[beta|0], row3=[b_mu2|0], rows 4..7 padding.
    vecs = jnp.zeros((8, 2 * conf_dim), jnp.float32)
    vecs = vecs.at[0].set(jnp.concatenate([b_mu1, b_lv1]))
    vecs = vecs.at[1, :conf_dim].set(1.0)                         # LN gamma
    # LN beta and mu2 bias stay zero (matches torch init).

    return {
        "code_embed_weight": jax.random.normal(
            ks[5], (num_codes, code_dim), jnp.float32),
        "code_emb_momentum": jax.nn.initializers.orthogonal()(
            ks[6], (num_codes, code_dim), jnp.float32),
        "w1": w1,
        "w_mu2": w_mu2,
        "vecs": vecs,
    }


def _reference_forward(h, code_ids, params, momentum=0.95,
                       compute_dtype=jnp.bfloat16):
    """Pure-JAX reference mirroring the PyTorch forward (autocast-bf16 matmuls)."""
    new_mom = (momentum * params["code_emb_momentum"]
               + (1.0 - momentum) * params["code_embed_weight"])
    B, S, _ = h.shape
    conf = params["w_mu2"].shape[0]
    if code_ids.ndim == 2 and code_ids.shape[1] != S:
        code_ids = code_ids[:, :S]
    ids = jnp.clip(code_ids, 0, new_mom.shape[0] - 1)
    code_feat = new_mom[ids]                                   # (B, S, code_dim)
    combined = jnp.concatenate([h.astype(jnp.float32), code_feat],
                               axis=-1).astype(compute_dtype)
    pre = (jnp.dot(combined, params["w1"].astype(compute_dtype),
                   preferred_element_type=jnp.float32) + params["vecs"][0:1, :])
    pre_mu, pre_lv = pre[..., :conf], pre[..., conf:]
    mean = pre_mu.mean(-1, keepdims=True)
    var = ((pre_mu - mean) ** 2).mean(-1, keepdims=True)
    ln = ((pre_mu - mean) / jnp.sqrt(var + _LN_EPS)
          * params["vecs"][1, :conf] + params["vecs"][2, :conf])
    mu = jnp.tanh(jnp.dot(ln.astype(compute_dtype),
                          params["w_mu2"].astype(compute_dtype),
                          preferred_element_type=jnp.float32)
                  + params["vecs"][3, :conf])
    mu = jnp.clip(mu, _MU_MIN, _MU_MAX)
    logvar = jnp.clip(pre_lv, _LOGVAR_MIN, _LOGVAR_MAX)
    return (mu.astype(compute_dtype), logvar.astype(compute_dtype)), new_mom


if __name__ == "__main__":
    # Small shapes consistent with the module's forward (h is (B, S, h_proj)).
    B, S = 2, 8
    h_proj_dim, code_dim, conf_dim, num_codes = 32, 16, 16, 32
    momentum = 0.95

    key = jax.random.PRNGKey(0)
    kh, kc, kp = jax.random.split(key, 3)

    h = jax.random.normal(kh, (B, S, h_proj_dim), jnp.float32)
    # Longer-than-seq ids with some out-of-range values: exercises both the
    # truncation and the clamp paths of forward().
    code_ids = jax.random.randint(kc, (B, S + 4), 0, num_codes + 4, jnp.int32)
    params = init_params(kp, num_codes, code_dim, conf_dim, h_proj_dim)

    (mu, logvar), new_mom = confounder_prior_forward(
        h, code_ids, params, momentum=momentum)
    mu, logvar, new_mom = jax.block_until_ready((mu, logvar, new_mom))

    (mu_ref, lv_ref), mom_ref = _reference_forward(h, code_ids, params, momentum)
    assert mu.shape == (B, S, conf_dim) and logvar.shape == (B, S, conf_dim)
    # bf16 matmul/store path -> loosened tolerances vs the f32-exact check.
    assert jnp.allclose(mu.astype(jnp.float32), mu_ref.astype(jnp.float32),
                        atol=1e-2, rtol=1e-2), "mu mismatch"
    assert jnp.allclose(logvar.astype(jnp.float32), lv_ref.astype(jnp.float32),
                        atol=1e-2, rtol=1e-2), "logvar mismatch"
    assert jnp.allclose(new_mom, mom_ref, atol=1e-6, rtol=1e-6), "momentum mismatch"

    print("KERNEL_OK")
</pallas_src>

<mosaic_0001>
module attributes {stable_mosaic.version = 11 : i64} {
  func.func @_confounder_prior_kernel(%arg0: i32, %arg1: memref<16x1xi32, #tpu.memory_space<vmem>>, %arg2: memref<16x32xbf16, #tpu.memory_space<vmem>>, %arg3: memref<32x16xbf16, #tpu.memory_space<vmem>>, %arg4: memref<48x32xbf16, #tpu.memory_space<vmem>>, %arg5: memref<16x16xbf16, #tpu.memory_space<vmem>>, %arg6: memref<8x32xf32, #tpu.memory_space<vmem>>, %arg7: memref<16x32xbf16, #tpu.memory_space<vmem>>) attributes {dimension_semantics = [#tpu.dimension_semantics<parallel>], iteration_bounds = array<i64: 1>, scalar_prefetch = 0 : i64, scratch_operands = 0 : i64, tpu.core_type = #tpu.core_type<tc>, window_params = [{transform_indices = @transform_0, window_bounds = array<i64: 16, 1>}, {transform_indices = @transform_1, window_bounds = array<i64: 16, 32>}, {pipeline_mode = #tpu.pipeline_mode<synchronous>, transform_indices = @transform_2, window_bounds = array<i64: 32, 16>}, {pipeline_mode = #tpu.pipeline_mode<synchronous>, transform_indices = @transform_3, window_bounds = array<i64: 48, 32>}, {pipeline_mode = #tpu.pipeline_mode<synchronous>, transform_indices = @transform_4, window_bounds = array<i64: 16, 16>}, {pipeline_mode = #tpu.pipeline_mode<synchronous>, transform_indices = @transform_5, window_bounds = array<i64: 8, 32>}, {transform_indices = @transform_6, window_bounds = array<i64: 16, 32>}]} {
    %c0 = arith.constant 0 : index
    %c0_0 = arith.constant 0 : index
    %0 = vector.load %arg1[%c0, %c0_0] : memref<16x1xi32, #tpu.memory_space<vmem>>, vector<16x1xi32>
    %c0_i32 = arith.constant 0 : i32
    %c31_i32 = arith.constant 31 : i32
    %1 = vector.broadcast %c0_i32 : i32 to vector<16x1xi32>
    %2 = arith.maxsi %1, %0 : vector<16x1xi32>
    %3 = vector.broadcast %c31_i32 : i32 to vector<16x1xi32>
    %4 = arith.minsi %3, %2 : vector<16x1xi32>
    %5 = tpu.iota {dimensions = array<i32: 1>} : vector<16x32xi32>
    %6 = vector.broadcast %4 : vector<16x1xi32> to vector<16x32xi32>
    %7 = arith.cmpi eq, %6, %5 : vector<16x32xi32>
    %8 = arith.extui %7 : vector<16x32xi1> to vector<16x32xi32>
    %9 = arith.sitofp %8 : vector<16x32xi32> to vector<16x32xf32>
    %10 = arith.truncf %9 : vector<16x32xf32> to vector<16x32xbf16>
    %c0_1 = arith.constant 0 : index
    %c0_2 = arith.constant 0 : index
    %11 = vector.load %arg3[%c0_1, %c0_2] : memref<32x16xbf16, #tpu.memory_space<vmem>>, vector<32x16xbf16>
    %cst = arith.constant dense<0.000000e+00> : vector<16x16xf32>
    %12 = tpu.matmul %10, %11, %cst {dimension_numbers = #tpu.dot_dimension_numbers<[1], [0], [0], [1], [0, 0, 1, 1], [], []>} : vector<16x32xbf16>, vector<32x16xbf16>, vector<16x16xf32> -> vector<16x16xf32>
    %13 = arith.truncf %12 : vector<16x16xf32> to vector<16x16xbf16>
    %c0_3 = arith.constant 0 : index
    %c0_4 = arith.constant 0 : index
    %14 = vector.load %arg2[%c0_3, %c0_4] : memref<16x32xbf16, #tpu.memory_space<vmem>>, vector<16x32xbf16>
    %c0_5 = arith.constant 0 : index
    %c0_6 = arith.constant 0 : index
    %15 = vector.load %arg4[%c0_5, %c0_6] : memref<48x32xbf16, #tpu.memory_space<vmem>>, vector<48x32xbf16>
    %c0_7 = arith.constant 0 : index
    %c0_8 = arith.constant 0 : index
    %16 = vector.load %arg6[%c0_7, %c0_8] : memref<8x32xf32, #tpu.memory_space<vmem>>, vector<8x32xf32>
    %17 = vector.extract_strided_slice %15 {offsets = [0, 0], sizes = [32, 32], strides = [1, 1]} : vector<48x32xbf16> to vector<32x32xbf16>
    %cst_9 = arith.constant dense<0.000000e+00> : vector<16x32xf32>
    %18 = tpu.matmul %14, %17, %cst_9 {dimension_numbers = #tpu.dot_dimension_numbers<[1], [0], [0], [1], [0, 0, 1, 1], [], []>} : vector<16x32xbf16>, vector<32x32xbf16>, vector<16x32xf32> -> vector<16x32xf32>
    %19 = vector.extract_strided_slice %15 {offsets = [32, 0], sizes = [16, 32], strides = [1, 1]} : vector<48x32xbf16> to vector<16x32xbf16>
    %cst_10 = arith.constant dense<0.000000e+00> : vector<16x32xf32>
    %20 = tpu.matmul %13, %19, %cst_10 {dimension_numbers = #tpu.dot_dimension_numbers<[1], [0], [0], [1], [0, 0, 1, 1], [], []>} : vector<16x16xbf16>, vector<16x32xbf16>, vector<16x32xf32> -> vector<16x32xf32>
    %21 = arith.addf %18, %20 : vector<16x32xf32>
    %22 = vector.extract_strided_slice %16 {offsets = [0, 0], sizes = [1, 32], strides = [1, 1]} : vector<8x32xf32> to vector<1x32xf32>
    %23 = vector.broadcast %22 : vector<1x32xf32> to vector<16x32xf32>
    %24 = arith.addf %21, %23 : vector<16x32xf32>
    %25 = vector.extract_strided_slice %24 {offsets = [0, 0], sizes = [16, 16], strides = [1, 1]} : vector<16x32xf32> to vector<16x16xf32>
    %26 = vector.extract_strided_slice %24 {offsets = [0, 16], sizes = [16, 16], strides = [1, 1]} : vector<16x32xf32> to vector<16x16xf32>
    %cst_11 = arith.constant dense<0.000000e+00> : vector<16xf32>
    %27 = vector.multi_reduction <add>, %25, %cst_11 [1] : vector<16x16xf32> to vector<16xf32>
    %28 = vector.shape_cast %27 : vector<16xf32> to vector<16x1xf32>
    %cst_12 = arith.constant 1.600000e+01 : f32
    %29 = vector.broadcast %cst_12 : f32 to vector<16x1xf32>
    %30 = arith.divf %28, %29 : vector<16x1xf32>
    %31 = vector.broadcast %30 : vector<16x1xf32> to vector<16x16xf32>
    %32 = arith.subf %25, %31 : vector<16x16xf32>
    %33 = arith.mulf %32, %32 : vector<16x16xf32>
    %cst_13 = arith.constant dense<0.000000e+00> : vector<16xf32>
    %34 = vector.multi_reduction <add>, %33, %cst_13 [1] : vector<16x16xf32> to vector<16xf32>
    %35 = vector.shape_cast %34 : vector<16xf32> to vector<16x1xf32>
    %cst_14 = arith.constant 1.600000e+01 : f32
    %36 = vector.broadcast %cst_14 : f32 to vector<16x1xf32>
    %37 = arith.divf %35, %36 : vector<16x1xf32>
    %38 = vector.broadcast %30 : vector<16x1xf32> to vector<16x16xf32>
    %39 = arith.subf %25, %38 : vector<16x16xf32>
    %cst_15 = arith.constant 9.99999974E-6 : f32
    %40 = vector.broadcast %cst_15 : f32 to vector<16x1xf32>
    %41 = arith.addf %37, %40 : vector<16x1xf32>
    %42 = math.rsqrt %41 : vector<16x1xf32>
    %43 = vector.broadcast %42 : vector<16x1xf32> to vector<16x16xf32>
    %44 = arith.mulf %39, %43 : vector<16x16xf32>
    %45 = vector.extract_strided_slice %16 {offsets = [1, 0], sizes = [1, 16], strides = [1, 1]} : vector<8x32xf32> to vector<1x16xf32>
    %46 = vector.broadcast %45 : vector<1x16xf32> to vector<16x16xf32>
    %47 = arith.mulf %44, %46 : vector<16x16xf32>
    %48 = vector.extract_strided_slice %16 {offsets = [2, 0], sizes = [1, 16], strides = [1, 1]} : vector<8x32xf32> to vector<1x16xf32>
    %49 = vector.broadcast %48 : vector<1x16xf32> to vector<16x16xf32>
    %50 = arith.addf %47, %49 : vector<16x16xf32>
    %51 = arith.truncf %50 : vector<16x16xf32> to vector<16x16xbf16>
    %c0_16 = arith.constant 0 : index
    %c0_17 = arith.constant 0 : index
    %52 = vector.load %arg5[%c0_16, %c0_17] : memref<16x16xbf16, #tpu.memory_space<vmem>>, vector<16x16xbf16>
    %cst_18 = arith.constant dense<0.000000e+00> : vector<16x16xf32>
    %53 = tpu.matmul %51, %52, %cst_18 {dimension_numbers = #tpu.dot_dimension_numbers<[1], [0], [0], [1], [0, 0, 1, 1], [], []>} : vector<16x16xbf16>, vector<16x16xbf16>, vector<16x16xf32> -> vector<16x16xf32>
    %54 = vector.extract_strided_slice %16 {offsets = [3, 0], sizes = [1, 16], strides = [1, 1]} : vector<8x32xf32> to vector<1x16xf32>
    %55 = vector.broadcast %54 : vector<1x16xf32> to vector<16x16xf32>
    %56 = arith.addf %53, %55 : vector<16x16xf32>
    %57 = math.tanh %56 : vector<16x16xf32>
    %cst_19 = arith.constant -3.000000e+00 : f32
    %cst_20 = arith.constant 3.000000e+00 : f32
    %58 = vector.broadcast %cst_19 : f32 to vector<16x16xf32>
    %59 = arith.maximumf %58, %57 : vector<16x16xf32>
    %60 = vector.broadcast %cst_20 : f32 to vector<16x16xf32>
    %61 = arith.minimumf %60, %59 : vector<16x16xf32>
    %cst_21 = arith.constant -2.30258512 : f32
    %cst_22 = arith.constant 0.693147182 : f32
    %62 = vector.broadcast %cst_21 : f32 to vector<16x16xf32>
    %63 = arith.maximumf %62, %26 : vector<16x16xf32>
    %64 = vector.broadcast %cst_22 : f32 to vector<16x16xf32>
    %65 = arith.minimumf %64, %63 : vector<16x16xf32>
    %66 = tpu.concatenate %61, %65 in 1 : vector<16x16xf32>, vector<16x16xf32> -> vector<16x32xf32>
    %67 = arith.truncf %66 : vector<16x32xf32> to vector<16x32xbf16>
    %c0_23 = arith.constant 0 : index
    %c0_24 = arith.constant 0 : index
    %68 = vector.load %arg7[%c0_23, %c0_24] : memref<16x32xbf16, #tpu.memory_space<vmem>>, vector<16x32xbf16>
    tpu.vector_store %arg7[%c0_23, %c0_24], %67 {strides = array<i32>} : memref<16x32xbf16, #tpu.memory_space<vmem>>, vector<16x32xbf16>,
    return
  }
  func.func @transform_0(%arg0: i32) -> (i32, i32) {
    %c0_i32 = arith.constant 0 : i32
    %c0_i32_0 = arith.constant 0 : i32
    return %arg0, %c0_i32 : i32, i32
  }
  func.func @transform_1(%arg0: i32) -> (i32, i32) {
    %c0_i32 = arith.constant 0 : i32
    %c0_i32_0 = arith.constant 0 : i32
    return %arg0, %c0_i32 : i32, i32
  }
  func.func @transform_2(%arg0: i32) -> (i32, i32) {
    %c0_i32 = arith.constant 0 : i32
    %c0_i32_0 = arith.constant 0 : i32
    %c0_i32_1 = arith.constant 0 : i32
    return %c0_i32, %c0_i32_0 : i32, i32
  }
  func.func @transform_3(%arg0: i32) -> (i32, i32) {
    %c0_i32 = arith.constant 0 : i32
    %c0_i32_0 = arith.constant 0 : i32
    %c0_i32_1 = arith.constant 0 : i32
    return %c0_i32, %c0_i32_0 : i32, i32
  }
  func.func @transform_4(%arg0: i32) -> (i32, i32) {
    %c0_i32 = arith.constant 0 : i32
    %c0_i32_0 = arith.constant 0 : i32
    %c0_i32_1 = arith.constant 0 : i32
    return %c0_i32, %c0_i32_0 : i32, i32
  }
  func.func @transform_5(%arg0: i32) -> (i32, i32) {
    %c0_i32 = arith.constant 0 : i32
    %c0_i32_0 = arith.constant 0 : i32
    %c0_i32_1 = arith.constant 0 : i32
    return %c0_i32, %c0_i32_0 : i32, i32
  }
  func.func @transform_6(%arg0: i32) -> (i32, i32) {
    %c0_i32 = arith.constant 0 : i32
    %c0_i32_0 = arith.constant 0 : i32
    return %arg0, %c0_i32 : i32, i32
  }
}

</mosaic_0001>

<bundles_post_ra>
// kernel: tpu_custom_call.1
= control target key start
LH: loop header
LB: loop body
LE: loop exit
PB: predicated region body
PF: predicated region fallthrough
CT: control target
= control target key end

     0   :  { %v475_v2 = vmov 0   ;;  %v476_v3 = vmov 0.0   ;;  %vm477_vm4 = vmmov 0   ;;  %s563_s0 = inlined_call_operand.vmem [shape: s32[16,1], index: 0, kind: input, shape index: {}]   ;;  %s564_s1 = inlined_call_operand.vmem [shape: bf16[16,32], index: 1, kind: input, shape index: {}]   ;;  %s565_s2 = inlined_call_operand.vmem [shape: bf16[32,16], index: 2, kind: input, shape index: {}]   ;;  %s566_s3 = inlined_call_operand.vmem [shape: bf16[48,32], index: 3, kind: input, shape index: {}]   ;;  %s567_s4 = inlined_call_operand.vmem [shape: bf16[16,16], index: 4, kind: input, shape index: {}]   ;;  %s568_s5 = inlined_call_operand.vmem [shape: f32[8,32], index: 5, kind: input, shape index: {}]   ;;  %s569_s6 = inlined_call_operand.hbm [shape: bf16[16,32], index: 6, kind: output, shape index: {}]  }
   0x1   :  { %v25_v0 = vld [vmem:[%s563_s0] sm:$0xff]  ;;  %v26_v1 = vld [vmem:[%s563_s0 + $0x8] sm:$0xff]  ;;  %437 = vset.pattern.permute.xlu0 %v475_v2  ;;  %403 = vmatprep.subr.bf16.mxu0 %v476_v3 }
   0x2   :  { %vm27_vm0 = vcmp.gt.s32.totalorder %v25_v0, 0  ;;  %vm29_vm1 = vcmp.gt.s32.totalorder %v26_v1, 0  ;;  %v438_v4 = vld [vmem:[%s565_s2 + $0x8] sm:$0xff]   ;;  %411 = vmatprep.subr.bf16.mxu1 %v476_v3  ;;  %v439_v9 = vld [vmem:[%s565_s2] sm:$0xff]   ;;  %407 = vmatprep.mubr.msk.bf16.mxu0 %vm477_vm4, %v476_v3 }
   0x3   :  { %v28_v5 = vsel %vm27_vm0, %v25_v0, 0  ;;  %v30_v6 = vsel %vm29_vm1, %v26_v1, 0  ;;  %404 = vmatpush3.bf16.msra.mxu0 %v438_v4  ;;  %413 = vmatprep.mubr.msk.bf16.mxu1 %vm477_vm4, %v476_v3 }
   0x4   :  { %vm31_vm2 = vcmp.lt.s32.totalorder %v28_v5, 31  ;;  %vm33_vm3 = vcmp.lt.s32.totalorder %v30_v6, 31  ;;  %405 = vmatprep.subr.bf16.mxu0 %v476_v3 }
   0x5   :  { %v32_v7 = vsel %vm31_vm2, %v28_v5, 31  ;;  %v34_v8 = vsel %vm33_vm3, %v30_v6, 31 }
   0x6   :  { %38 = vperm.xlu0 %437, %v32_v7  }
   0x7   :  { %406 = vmatpush3.bf16.msra.mxu0 %v439_v9 }
   0x8   :  { %11 = vsyncpa [#allocation3], 0  ;;  %425 = vmatprep.subr.bf16.mxu0 %v476_v3  ;;  %v35_v10 = vlaneseq  ;;  %vm66_vm7 = vcmask 261120   ;;  %v440_v17 = vld [vmem:[%s566_s3 + $0x10] sm:$0xff]   ;;  %vm127_vm8 = vcmask 130048   ;;  %v441_v21 = vld [vmem:[%s566_s3 + $0x8] sm:$0xff]  }
   0x9   :  { %412 = vmatpush3.bf16.msra.mxu1 %v440_v17  ;;  %v442_v24 = vld [vmem:[%s566_s3] sm:$0xff]   ;;  %vm355_vm9 = vcmask 257024  }
   0xa   :  { %41 = vperm.xlu0 %437, %v34_v8   ;;  %v36_v11 = vand.u32 127, %v35_v10  ;;  %417 = vmatprep.subr.bf16.mxu1 %v476_v3  ;;  %v443_v25 = vld [vmem:[%s564_s1] sm:$0xff]   ;;  %v234_v26 = vshrl.u32 %v35_v10, 7 }
   0xb   :  { %v120_v31 = vld [vmem:[%s568_s5] sm:$0xff] }
   0xc   :  { %v235_v29 = vsub.s32 0, %v234_v26  ;;  %v444_v54 = vld [vmem:[%s567_s4] sm:$0xff]   ;;  %v268_v61 = vsub.s32 1, %v234_v26  ;;  %v274_v0 = vsub.s32 2, %v234_v26  ;;  %v283_v10 = vsub.s32 3, %v234_v26  ;;  %s478_s4 = smov [#allocation2]  }
   0xd   :  { %s363_s5 = sshll.u32 %s478_s4, 4  ;;  %s364_s5 = int_to_ptr.vmem [resolvable:$true] %s363_s5 }
   0xe   :  { %v236_v33 = vrot.slane %v120_v31, %v235_v29  ;;  %v269_v63 = vrot.slane %v120_v31, %v268_v61  ;;  %s453_s13 = scalar_lea.vmem %s364_s5, 128  ;;  %p458_p1 = scmp.lt.s32.totalorder %s364_s5, %s364_s5 }
   0xf   :  { %p454_p0 = scmp.ne.s32.totalorder %s364_s5, %s453_s13  ;;  %p459_p2 = scmp.lt.s32.totalorder %s453_s13, %s453_s13 }
  0x11   :  { %p460_p3 = por %p459_p2, %p458_p1 }
  0x13   :  { %p461_p4 = pnand %p460_p3, %p454_p0 }
  0x81   :  { %v39_v12 = vpop.permute.xlu0 %38 }
  0x82   :  { %vm43_vm5 = vcmp.eq.s32.totalorder %v39_v12, %v36_v11 }
  0x83   :  { %v374_v14 = vsel %vm43_vm5, 1.0, %v476_v3 }
  0x85   :  { %v42_v13 = vpop.permute.xlu0 %41 }
  0x86   :  { %vm44_vm6 = vcmp.eq.s32.totalorder %v42_v13, %v36_v11  ;;  %v284_v11 = vrot.slane %v120_v31, %v283_v10 }
  0x87   :  { %v375_v15 = vsel %vm44_vm6, 1.0, %v476_v3 }
  0x88   :  { %v49_v16 = vpack.c.bf16 %v375_v15, %v374_v14 }
  0x8a   :  { %408 = vmatmul.mubr.msk.bf16.vlgmr.msra.gmra.mxu0 %vm66_vm7, %v49_v16 }
  0x8b   :  { %427 = vmatprep.mubr.msk.bf16.mxu0 %vm477_vm4, %v476_v3  ;;  %426 = vmatpush3.bf16.msra.mxu0 %v444_v54 }
 0x14a   :  { %v104_v18 = vpop.f32.mrf.mxu0 }
 0x14c   :  { %v409_v19 = vpop.f32.mrf.mxu0 }
 0x14e   :  { %v107_v20 = vpop.f32.mrf.mxu0 }
 0x14f   :  { %v111_v22 = vpack.c.bf16 %v107_v20, %v104_v18 }
 0x150   :  { %v410_v23 = vpop.f32.mrf.mxu0 }
 0x151   :  { %414 = vmatmul.mubr.msk.bf16.vlgmr.msra.gmra.mxu1 %vm127_vm8, %v111_v22 }
 0x152   :  { %418 = vmatpush3.bf16.msra.mxu1 %v441_v21  ;;  %421 = vmatprep.mubr.msk.bf16.mxu1 %vm477_vm4, %v476_v3 }
 0x153   :  { %419 = vmatprep.subr.bf16.mxu1 %v476_v3  ;;  %v275_v3 = vrot.slane %v120_v31, %v274_v0 }
 0x156   :  { %420 = vmatpush3.bf16.msra.mxu1 %v442_v24 }
 0x159   :  { %422 = vmatmul.mubr.msk.bf16.vlgmr.msra.gmra.mxu1 %vm66_vm7, %v443_v25 }
 0x211   :  { %v165_v27 = vpop.f32.mrf.mxu1 }
 0x213   :  { %v415_v28 = vpop.f32.mrf.mxu1 }
 0x215   :  { %v168_v30 = vpop.f32.mrf.mxu1 }
 0x217   :  { %v416_v32 = vpop.f32.mrf.mxu1 }
 0x219   :  { %v226_v34 = vpop.f32.mrf.mxu1 }
 0x21a   :  { %v227_v35 = vadd.f32 %v226_v34, %v165_v27 }
 0x21b   :  { %v423_v36 = vpop.f32.mrf.mxu1 }
 0x21c   :  { %v237_v37 = vadd.f32 %v236_v33, %v227_v35 }
 0x21d   :  { %v229_v38 = vpop.f32.mrf.mxu1 }
 0x21e   :  { %v230_v39 = vadd.f32 %v229_v38, %v168_v30  ;;  %v239_v40 = vsel %vm127_vm8, %v237_v37, 0.0  ;;  %v341_v18 = vmax.f32 %v237_v37, -2.3025851 }
 0x21f   :  { %240 = vadd.xlane.f32.xlu1 %v239_v40  ;;  %v424_v41 = vpop.f32.mrf.mxu1 }
 0x220   :  { %v238_v42 = vadd.f32 %v236_v33, %v230_v39  ;;  %v343_v20 = vmin.f32 %v341_v18, 0.6931472 }
 0x222   :  { %v242_v43 = vsel %vm127_vm8, %v238_v42, 0.0  ;;  %v342_v21 = vmax.f32 %v238_v42, -2.3025851 }
 0x223   :  { %243 = vadd.xlane.f32.xlu1 %v242_v43 }
 0x224   :  { %v344_v26 = vmin.f32 %v342_v21, 0.6931472 }
 0x2a8   :  { %v241_v44 = vpop.xlane.xlu1 %240 }
 0x2a9   :  { %v246_v45 = vmul.f32 0.0625, %v241_v44 }
 0x2ab   :  { %v248_v46 = vsub.f32 %v237_v37, %v246_v45 }
 0x2ac   :  { %v244_v47 = vpop.xlane.xlu1 %243 }
 0x2ad   :  { %v247_v48 = vmul.f32 0.0625, %v244_v47  ;;  %v250_v49 = vmul.f32 %v248_v46, %v248_v46 }
 0x2af   :  { %v249_v50 = vsub.f32 %v238_v42, %v247_v48  ;;  %v252_v51 = vsel %vm127_vm8, %v250_v49, 0.0 }
 0x2b0   :  { %253 = vadd.xlane.f32.xlu0 %v252_v51 }
 0x2b1   :  { %v251_v52 = vmul.f32 %v249_v50, %v249_v50 }
 0x2b3   :  { %v255_v53 = vsel %vm127_vm8, %v251_v52, 0.0 }
 0x2b4   :  { %256 = vadd.xlane.f32.xlu1 %v255_v53 }
 0x339   :  { %v254_v55 = vpop.xlane.xlu0 %253 }
 0x33a   :  { %v258_v56 = vmul.f32 0.0625, %v254_v55 }
 0x33c   :  { %v260_v57 = vadd.f32 1e-05, %v258_v56 }
 0x33d   :  { %v257_v58 = vpop.xlane.xlu1 %256 }
 0x33e   :  { %445 = vrsqrt.f32 %v260_v57  ;;  %v259_v59 = vmul.f32 0.0625, %v257_v58 }
 0x340   :  { %v261_v60 = vadd.f32 1e-05, %v259_v59 }
 0x342   :  { %447 = vrsqrt.f32 %v261_v60 }
 0x34b   :  { %v446_v62 = vpop.eup %445 }
 0x34c   :  { %v264_v1 = vmul.f32 %v446_v62, %v248_v46 }
 0x34e   :  { %v270_v5 = vmul.f32 %v269_v63, %v264_v1 }
 0x34f   :  { %v448_v2 = vpop.eup %447 }
 0x350   :  { %v265_v4 = vmul.f32 %v448_v2, %v249_v50  ;;  %v276_v7 = vadd.f32 %v275_v3, %v270_v5 }
 0x352   :  { %v271_v6 = vmul.f32 %v269_v63, %v265_v4 }
 0x354   :  { %v277_v8 = vadd.f32 %v275_v3, %v271_v6 }
 0x356   :  { %v278_v9 = vpack.c.bf16 %v277_v8, %v276_v7 }
 0x358   :  { %428 = vmatmul.mubr.msk.bf16.vlgmr.msra.gmra.mxu0 %vm127_vm8, %v278_v9 }
 0x418   :  { %v328_v12 = vpop.f32.mrf.mxu0 }
 0x419   :  { %v329_v13 = vadd.f32 %v328_v12, %v284_v11 }
 0x41a   :  { %v429_v14 = vpop.f32.mrf.mxu0 }
 0x41b   :  { %449 = vtanh.f32 %v329_v13 }
 0x41c   :  { %v331_v15 = vpop.f32.mrf.mxu0 }
 0x41d   :  { %v332_v16 = vadd.f32 %v331_v15, %v284_v11 }
 0x41e   :  { %v430_v17 = vpop.f32.mrf.mxu0 }
 0x41f   :  { %451 = vtanh.f32 %v332_v16 }
 0x428   :  { %v450_v19 = vpop.eup %449 }
 0x429   :  { %v387_v22 = vclamps-f32 %v450_v19, 3.0 }
 0x42b   :  { %v345_v23 = vsel %vm127_vm8, %v387_v22, %v343_v20 }
 0x42c   :  { %v452_v24 = vpop.eup %451  ;;  %v391_v25 = vpack.c.bf16 %v345_v23, %v345_v23 }
 0x42d   :  { %v388_v27 = vclamps-f32 %v452_v24, 3.0 }
 0x42e   :  { %356 = vst.msk [vmem:[#allocation2] sm:$0xf] %vm355_vm9, %v391_v25 }
 0x42f   :  { %v346_v28 = vsel %vm127_vm8, %v388_v27, %v344_v26 }
 0x430   :  { %v392_v29 = vpack.c.bf16 %v346_v28, %v346_v28 }
 0x432   :  { %357 = vst.msk [vmem:[#allocation2 + $0x4] sm:$0xf] %vm355_vm9, %v392_v29 }
 0x433   :  { %464 = shalt.err (!%p461_p4)
}
 0x434   :  { %s479_s14 = smov 64   ;;  %s480_s15 = smov 4  }
 0x435   :  { %369 = dma.vmem_to_hbm [thread:$0]  %s364_s5, 128, %s569_s6, [#allocation3], %s479_s14, %s479_s14, %s480_s15  }
 0x436   :  { %473 = dma.done.wait [#allocation3], 128  }
 0x437   :  { %474 = vsyncadd [#allocation3], 4294967168 }
 0x438   :  { %373 = vsyncpa [#allocation3], 1 }

</bundles_post_ra>
